<compile_context>
chip_gen: v5e
topology: v5e:2x2
jax: 0.10.0
libtpu: 0.0.40
codegen_flags: <defaults>
</compile_context>

<pallas_src>
import jax
import jax.numpy as jnp
from jax import lax
from jax.experimental import pallas as pl
from jax.experimental.pallas import tpu as pltpu


# ----------------------------------------------------------------------------
# Fused 1x1-conv (+bias) kernel, single invocation (no grid).
#   x_ref : (Cin,  L)   activations, L = N*H*W on the lane axis
#   w_ref : (Cout, Cin) 1x1 conv weight
#   b_ref : (Cout, 1)   bias (broadcast over the lane axis)
#   o_ref : (Cout, L)   output, lane-dense
# ----------------------------------------------------------------------------
def outconv_kernel(x_ref, w_ref, b_ref, o_ref):
    x = x_ref[...]                                   # (Cin, L)
    w = w_ref[...]                                   # (Cout, Cin)
    cin = x.shape[0]

    # acc = bias, lane-broadcast to the full output block (f32).
    acc = jnp.broadcast_to(b_ref[...], o_ref.shape).astype(jnp.float32)

    # Unrolled K=Cin VPU accumulation: one vmul+vadd pair per input channel.
    # (Cout,1) * (1,L) broadcasts to (Cout, L); exact f32, no MXU involved.
    for c in range(cin):                             # static trace-time unroll
        acc = acc + w[:, c:c + 1] * x[c:c + 1, :]

    o_ref[...] = acc.astype(o_ref.dtype)


def outconv_forward(x_nchw, w_oihw, b):
    """OutConv forward.  x: (N, Cin, H, W) f32, w: (Cout, Cin, 1, 1), b: (Cout,)."""
    N, Cin, H, W = x_nchw.shape
    Cout = w_oihw.shape[0]
    HW = H * W
    L = N * HW

    # Fold batch onto the lane axis: (N, Cin, H, W) -> (Cin, N*H*W).
    # This 8 KB transpose fuses into the surrounding XLA graph; it buys a
    # single-block, grid-free kernel with a 512-wide lane-dense output.
    x2 = x_nchw.transpose(1, 0, 2, 3).reshape(Cin, L)
    w2 = w_oihw.reshape(Cout, Cin)
    b2 = b.reshape(Cout, 1)

    cost = pl.CostEstimate(
        flops=2 * N * Cout * Cin * HW,
        transcendentals=0,
        bytes_accessed=4 * (Cin * L + Cout * Cin + Cout + Cout * L),
    )

    out = pl.pallas_call(
        outconv_kernel,
        out_shape=jax.ShapeDtypeStruct((Cout, L), jnp.float32),
        in_specs=[
            pl.BlockSpec(memory_space=pltpu.MemorySpace.VMEM),  # x  (Cin, L)
            pl.BlockSpec(memory_space=pltpu.MemorySpace.VMEM),  # w  (Cout, Cin)
            pl.BlockSpec(memory_space=pltpu.MemorySpace.VMEM),  # b  (Cout, 1)
        ],
        out_specs=pl.BlockSpec(memory_space=pltpu.MemorySpace.VMEM),
        cost_estimate=cost,
    )(x2, w2, b2)

    # (Cout, N*H*W) -> (N, Cout, H, W)
    return out.reshape(Cout, N, H, W).transpose(1, 0, 2, 3)


# Pure-JAX reference mirroring the PyTorch forward (for a correctness check).
def outconv_reference(x_nchw, w_oihw, b):
    y = lax.conv_general_dilated(
        x_nchw, w_oihw, window_strides=(1, 1), padding="VALID",
        dimension_numbers=("NCHW", "OIHW", "NCHW"),
        precision=lax.Precision.HIGHEST)
    return y + b.reshape(1, -1, 1, 1)


if __name__ == "__main__":
    in_channels, out_channels = 4, 8
    N, H, W = 2, 16, 16

    key = jax.random.PRNGKey(0)
    kx, kw, kb = jax.random.split(key, 3)
    x = jax.random.normal(kx, (N, in_channels, H, W), jnp.float32)
    # PyTorch-shaped 1x1 conv weight (Cout, Cin, 1, 1) and bias (Cout,)
    w = 0.1 * jax.random.normal(kw, (out_channels, in_channels, 1, 1), jnp.float32)
    b = 0.1 * jax.random.normal(kb, (out_channels,), jnp.float32)

    out = jax.block_until_ready(outconv_forward(x, w, b))
    ref = jax.block_until_ready(outconv_reference(x, w, b))

    assert out.shape == (N, out_channels, H, W), out.shape
    assert jnp.allclose(out, ref, rtol=1e-4, atol=1e-4), float(jnp.max(jnp.abs(out - ref)))

    print("KERNEL_OK")
</pallas_src>

<mosaic_0001>
module attributes {stable_mosaic.version = 11 : i64} {
  func.func @outconv_kernel(%arg0: memref<4x512xf32, #tpu.memory_space<vmem>>, %arg1: memref<8x4xf32, #tpu.memory_space<vmem>>, %arg2: memref<8x1xf32, #tpu.memory_space<vmem>>, %arg3: memref<8x512xf32, #tpu.memory_space<vmem>>) attributes {dimension_semantics = [], scalar_prefetch = 0 : i64, scratch_operands = 0 : i64, tpu.core_type = #tpu.core_type<tc>} {
    %c0 = arith.constant 0 : index
    %c0_0 = arith.constant 0 : index
    %0 = vector.load %arg0[%c0, %c0_0] : memref<4x512xf32, #tpu.memory_space<vmem>>, vector<4x512xf32>
    %c0_1 = arith.constant 0 : index
    %c0_2 = arith.constant 0 : index
    %1 = vector.load %arg1[%c0_1, %c0_2] : memref<8x4xf32, #tpu.memory_space<vmem>>, vector<8x4xf32>
    %c0_3 = arith.constant 0 : index
    %c0_4 = arith.constant 0 : index
    %2 = vector.load %arg2[%c0_3, %c0_4] : memref<8x1xf32, #tpu.memory_space<vmem>>, vector<8x1xf32>
    %3 = vector.shape_cast %2 : vector<8x1xf32> to vector<8x1xf32>
    %4 = vector.broadcast %3 : vector<8x1xf32> to vector<8x512xf32>
    %5 = vector.extract_strided_slice %1 {offsets = [0, 0], sizes = [8, 1], strides = [1, 1]} : vector<8x4xf32> to vector<8x1xf32>
    %6 = vector.extract_strided_slice %0 {offsets = [0, 0], sizes = [1, 512], strides = [1, 1]} : vector<4x512xf32> to vector<1x512xf32>
    %7 = vector.broadcast %5 : vector<8x1xf32> to vector<8x512xf32>
    %8 = vector.broadcast %6 : vector<1x512xf32> to vector<8x512xf32>
    %9 = arith.mulf %7, %8 : vector<8x512xf32>
    %10 = arith.addf %4, %9 : vector<8x512xf32>
    %11 = vector.extract_strided_slice %1 {offsets = [0, 1], sizes = [8, 1], strides = [1, 1]} : vector<8x4xf32> to vector<8x1xf32>
    %12 = vector.extract_strided_slice %0 {offsets = [1, 0], sizes = [1, 512], strides = [1, 1]} : vector<4x512xf32> to vector<1x512xf32>
    %13 = vector.broadcast %11 : vector<8x1xf32> to vector<8x512xf32>
    %14 = vector.broadcast %12 : vector<1x512xf32> to vector<8x512xf32>
    %15 = arith.mulf %13, %14 : vector<8x512xf32>
    %16 = arith.addf %10, %15 : vector<8x512xf32>
    %17 = vector.extract_strided_slice %1 {offsets = [0, 2], sizes = [8, 1], strides = [1, 1]} : vector<8x4xf32> to vector<8x1xf32>
    %18 = vector.extract_strided_slice %0 {offsets = [2, 0], sizes = [1, 512], strides = [1, 1]} : vector<4x512xf32> to vector<1x512xf32>
    %19 = vector.broadcast %17 : vector<8x1xf32> to vector<8x512xf32>
    %20 = vector.broadcast %18 : vector<1x512xf32> to vector<8x512xf32>
    %21 = arith.mulf %19, %20 : vector<8x512xf32>
    %22 = arith.addf %16, %21 : vector<8x512xf32>
    %23 = vector.extract_strided_slice %1 {offsets = [0, 3], sizes = [8, 1], strides = [1, 1]} : vector<8x4xf32> to vector<8x1xf32>
    %24 = vector.extract_strided_slice %0 {offsets = [3, 0], sizes = [1, 512], strides = [1, 1]} : vector<4x512xf32> to vector<1x512xf32>
    %25 = vector.broadcast %23 : vector<8x1xf32> to vector<8x512xf32>
    %26 = vector.broadcast %24 : vector<1x512xf32> to vector<8x512xf32>
    %27 = arith.mulf %25, %26 : vector<8x512xf32>
    %28 = arith.addf %22, %27 : vector<8x512xf32>
    %c0_5 = arith.constant 0 : index
    %c0_6 = arith.constant 0 : index
    %29 = vector.load %arg3[%c0_5, %c0_6] : memref<8x512xf32, #tpu.memory_space<vmem>>, vector<8x512xf32>
    tpu.vector_store %arg3[%c0_5, %c0_6], %28 {strides = array<i32>} : memref<8x512xf32, #tpu.memory_space<vmem>>, vector<8x512xf32>,
    return
  }
}

</mosaic_0001>

<bundles_post_ra>
// kernel: tpu_custom_call.1
= control target key start
LH: loop header
LB: loop body
LE: loop exit
PB: predicated region body
PF: predicated region fallthrough
CT: control target
= control target key end

     0   :  { %v179_v1 = vmov 0   ;;  %v180_v2 = vmov 1   ;;  %s219_s0 = inlined_call_operand.vmem [shape: f32[4,512], index: 0, kind: input, shape index: {}]   ;;  %s220_s1 = inlined_call_operand.vmem [shape: f32[8,4], index: 1, kind: input, shape index: {}]   ;;  %s221_s2 = inlined_call_operand.vmem [shape: f32[8,1], index: 2, kind: input, shape index: {}]   ;;  %s222_s3 = inlined_call_operand.hbm [shape: f32[8,512], index: 3, kind: output, shape index: {}]  }
   0x1   :  { %v17_v0 = vld [vmem:[%s220_s1] sm:$0xff]  ;;  %148 = vset.pattern.permute.xlu0 %v179_v1  ;;  %149 = vset.pattern.permute.xlu1 %v180_v2 }
   0x2   :  { %8 = vsyncpa [#allocation3], 0  ;;  %26 = vperm.xlu0 %148, %v17_v0   ;;  %52 = vperm.xlu1 %149, %v17_v0   ;;  %v181_v3 = vmov 3   ;;  %v18_v4 = vld [vmem:[%s221_s2] sm:$0xff]  ;;  %v182_v5 = vmov 2   ;;  %v16_v7 = vld [vmem:[%s219_s0 + $0x8] sm:$0xff] }
   0x3   :  { %151 = vset.pattern.permute.xlu2 %v181_v3  ;;  %v15_v6 = vld [vmem:[%s219_s0] sm:$0xff]  ;;  %v105_v10 = vperm.slane %v16_v7, 3  ;;  %v33_v13 = vperm.slane %v16_v7, 0  ;;  %v34_v14 = vperm.slane %v16_v7, 4  ;;  %v57_v19 = vperm.slane %v16_v7, 1  ;;  %s183_s0 = smov [#allocation2]  }
   0x4   :  { %100 = vperm.xlu2 %151, %v17_v0   ;;  %v103_v8 = vperm.slane %v15_v6, 3  ;;  %v104_v9 = vperm.slane %v15_v6, 7  ;;  %v31_v11 = vperm.slane %v15_v6, 0  ;;  %v32_v12 = vperm.slane %v15_v6, 4  ;;  %s132_s2 = sshll.u32 %s183_s0, 4  ;;  %s134_s21 = sshll.u32 %s222_s3, 4  ;;  %s133_s2 = int_to_ptr.vmem [resolvable:$true] %s132_s2  ;;  %s135_s21 = int_to_ptr.hbm [resolvable:$true] %s134_s21 }
   0x5   :  { %v55_v17 = vperm.slane %v15_v6, 1  ;;  %v56_v18 = vperm.slane %v15_v6, 5  ;;  %v58_v20 = vperm.slane %v16_v7, 5  ;;  %v79_v21 = vperm.slane %v15_v6, 2 }
   0x6   :  { %v80_v22 = vperm.slane %v15_v6, 6  ;;  %v81_v23 = vperm.slane %v16_v7, 2  ;;  %v82_v24 = vperm.slane %v16_v7, 6  ;;  %v106_v25 = vperm.slane %v16_v7, 7 }
   0x7   :  { %v111_v26 = vperm.slane %v103_v8, 3  ;;  %v112_v27 = vperm.slane %v104_v9, 3  ;;  %v113_v28 = vperm.slane %v105_v10, 3  ;;  %v39_v29 = vperm.slane %v31_v11, 0 }
   0x8   :  { %v40_v30 = vperm.slane %v32_v12, 0  ;;  %v41_v31 = vperm.slane %v33_v13, 0  ;;  %v42_v32 = vperm.slane %v34_v14, 0  ;;  %v63_v34 = vperm.slane %v55_v17, 1 }
   0x9   :  { %v64_v35 = vperm.slane %v56_v18, 1  ;;  %v65_v36 = vperm.slane %v57_v19, 1  ;;  %v66_v37 = vperm.slane %v58_v20, 1  ;;  %v87_v38 = vperm.slane %v79_v21, 2 }
   0xa   :  { %21 = vperm.xlu0 %148, %v18_v4   ;;  %150 = vset.pattern.permute.xlu1 %v182_v5  ;;  %v88_v39 = vperm.slane %v80_v22, 2  ;;  %v89_v40 = vperm.slane %v81_v23, 2  ;;  %v90_v41 = vperm.slane %v82_v24, 2  ;;  %v114_v42 = vperm.slane %v106_v25, 3 }
   0xb   :  { %76 = vperm.xlu1 %150, %v17_v0  }
  0x12   :  { %152 = vset.pattern.permute.xlu0 %v181_v3 }
  0x5e   :  { %v101_v33 = vpop.permute.xlu2 %100 }
  0x5f   :  { %v115_v43 = vmul.f32 %v111_v26, %v101_v33  ;;  %v116_v44 = vmul.f32 %v112_v27, %v101_v33  ;;  %v117_v45 = vmul.f32 %v113_v28, %v101_v33  ;;  %v118_v4 = vmul.f32 %v114_v42, %v101_v33 }
  0x74   :  { %v27_v15 = vpop.permute.xlu0 %26  ;;  %v53_v16 = vpop.permute.xlu1 %52 }
  0x75   :  { %v43_v46 = vmul.f32 %v39_v29, %v27_v15  ;;  %v44_v47 = vmul.f32 %v40_v30, %v27_v15  ;;  %v45_v48 = vmul.f32 %v41_v31, %v27_v15  ;;  %v46_v49 = vmul.f32 %v42_v32, %v27_v15 }
  0x76   :  { %v67_v50 = vmul.f32 %v63_v34, %v53_v16  ;;  %v68_v51 = vmul.f32 %v64_v35, %v53_v16  ;;  %v69_v52 = vmul.f32 %v65_v36, %v53_v16  ;;  %v70_v53 = vmul.f32 %v66_v37, %v53_v16 }
  0x7c   :  { %v22_v54 = vpop.permute.xlu0 %21 }
  0x7d   :  { %v47_v55 = vadd.f32 %v43_v46, %v22_v54  ;;  %v48_v56 = vadd.f32 %v44_v47, %v22_v54  ;;  %v49_v57 = vadd.f32 %v45_v48, %v22_v54  ;;  %v50_v58 = vadd.f32 %v46_v49, %v22_v54  ;;  %v77_v59 = vpop.permute.xlu1 %76 }
  0x7e   :  { %v91_v60 = vmul.f32 %v87_v38, %v77_v59  ;;  %v92_v61 = vmul.f32 %v88_v39, %v77_v59  ;;  %v93_v62 = vmul.f32 %v89_v40, %v77_v59  ;;  %v94_v63 = vmul.f32 %v90_v41, %v77_v59 }
  0x7f   :  { %v71_v0 = vadd.f32 %v67_v50, %v47_v55  ;;  %v72_v1 = vadd.f32 %v68_v51, %v48_v56  ;;  %v73_v2 = vadd.f32 %v69_v52, %v49_v57  ;;  %v74_v3 = vadd.f32 %v70_v53, %v50_v58 }
  0x81   :  { %v95_v5 = vadd.f32 %v91_v60, %v71_v0  ;;  %v96_v6 = vadd.f32 %v92_v61, %v72_v1  ;;  %v97_v7 = vadd.f32 %v93_v62, %v73_v2  ;;  %v98_v8 = vadd.f32 %v94_v63, %v74_v3 }
  0x83   :  { %v119_v9 = vadd.f32 %v115_v43, %v95_v5  ;;  %v120_v10 = vadd.f32 %v116_v44, %v96_v6  ;;  %v121_v11 = vadd.f32 %v117_v45, %v97_v7  ;;  %v122_v12 = vadd.f32 %v118_v4, %v98_v8 }
  0x85   :  { %123 = vst [vmem:[#allocation2] sm:$0xff] %v119_v9 }
  0x86   :  { %124 = vst [vmem:[#allocation2 + $0x8] sm:$0xff] %v120_v10 }
  0x87   :  { %125 = vst [vmem:[#allocation2 + $0x10] sm:$0xff] %v121_v11 }
  0x88   :  { %126 = vst [vmem:[#allocation2 + $0x18] sm:$0xff] %v122_v12 }
  0x89   :  { %137 = dma.vmem_to_hbm [thread:$0]  %s133_s2, 512, %s135_s21, [#allocation3]  }
  0x8a   :  { %177 = dma.done.wait [#allocation3], 512  }
  0x8b   :  { %178 = vsyncadd [#allocation3], 4294966784 }
  0x8c   :  { %142 = vsyncpa [#allocation3], 1 }

</bundles_post_ra>
